<compile_context>
chip_gen: v7x
topology: tpu7x:2x2x1
jax: 0.10.0
libtpu: 0.0.40
codegen_flags: <defaults>
</compile_context>

<pallas_src>
import jax
import jax.numpy as jnp
from jax import lax
from jax.experimental import pallas as pl
from jax.experimental.pallas import tpu as pltpu

IN_FEATURES = 1026
HIDDEN = 64
MAX_TB = 1024  # f32 x tile at 1024 rows ~4.2 MB, ~8.4 MB double buffered (v5e-safe)


def _round_up(n: int, m: int) -> int:
    return ((n + m - 1) // m) * m


def _pick_batch_tile(B: int) -> int:
    """Batch tile: full array for tiny B, else a 128-multiple giving ~>=8 steps."""
    if B <= 128:
        return B  # single block; block dims equal full array dims (always legal)
    tb = 128 * pl.cdiv(B, 8 * 128)        # aim for >= 8 grid steps
    return max(128, min(MAX_TB, _round_up(tb, 128)))


def mlp_kernel(x_ref, w1_ref, b1_ref, w2_ref, b2_ref, w3_ref, b3_ref, o_ref):
    # x_ref : (TB, 1026) f32   (cast to bf16 here -> no extra HBM pass over x)
    # w1_ref: (1026, 64) bf16  b1/b2: (1, 64) f32   w2: (64, 64) f32
    # w3_ref: (1, 64)    f32   b3_ref: (1,) f32 in SMEM
    # o_ref : (1, TB)    f32   (lane-dense sigmoid row; batch lives on lanes)
    x_bf = x_ref[...].astype(jnp.bfloat16)
    h1 = jnp.dot(x_bf, w1_ref[...], preferred_element_type=jnp.float32)
    h1 = jnp.maximum(h1 + b1_ref[...], 0.0)                      # relu(linear1)

    h2 = jnp.dot(h1, w2_ref[...], preferred_element_type=jnp.float32)
    h2 = jnp.maximum(h2 + b2_ref[...], 0.0)                      # relu(linear2)

    # Lane-dense final layer: (1, 64) . (TB, 64) contracted on the hidden axis
    # -> (1, TB) logits row.
    logits = lax.dot_general(
        w3_ref[...], h2, (((1,), (1,)), ((), ())),
        preferred_element_type=jnp.float32) + b3_ref[0]

    # Exact sigmoid (exp + divide both have large slack under the DMA).
    o_ref[...] = (1.0 / (1.0 + jnp.exp(-logits))).astype(o_ref.dtype)


def mlp_forward(x, params):
    """x: (B, 1026) f32 -> (B, 1) f32, same semantics as the PyTorch module."""
    w1, b1, w2, b2, w3, b3 = params
    B, K = x.shape
    assert K == IN_FEATURES, "input must have shape (batch, 1026)"

    TB = _pick_batch_tile(B)
    grid = (pl.cdiv(B, TB),)

    # One-time tiny weight prep (would live at init time in a real model).
    w1_bf = w1.astype(jnp.bfloat16)                       # (1026, 64), ~131 KB
    w2_f = w2.astype(jnp.float32)
    b1_r = b1.reshape(1, HIDDEN).astype(jnp.float32)
    b2_r = b2.reshape(1, HIDDEN).astype(jnp.float32)
    w3_r = w3.reshape(1, HIDDEN).astype(jnp.float32)      # (64, 1) -> (1, 64) row
    b3_r = b3.reshape(1).astype(jnp.float32)

    flops = 2 * B * (K * HIDDEN + HIDDEN * HIDDEN + HIDDEN)
    bytes_accessed = (x.size * 4 + w1_bf.size * 2
                      + (w2_f.size + b1_r.size + b2_r.size + w3_r.size + 1) * 4
                      + B * 4)

    out = pl.pallas_call(
        mlp_kernel,
        out_shape=jax.ShapeDtypeStruct((1, B), jnp.float32),
        grid=grid,
        in_specs=[
            pl.BlockSpec((TB, K), lambda i: (i, 0)),               # x: streamed f32
            pl.BlockSpec((K, HIDDEN), lambda i: (0, 0)),           # w1: resident bf16
            pl.BlockSpec((1, HIDDEN), lambda i: (0, 0)),           # b1
            pl.BlockSpec((HIDDEN, HIDDEN), lambda i: (0, 0)),      # w2
            pl.BlockSpec((1, HIDDEN), lambda i: (0, 0)),           # b2
            pl.BlockSpec((1, HIDDEN), lambda i: (0, 0)),           # w3 row
            pl.BlockSpec(memory_space=pltpu.MemorySpace.SMEM),     # b3 scalar
        ],
        out_specs=pl.BlockSpec((1, TB), lambda i: (0, i)),         # lane-dense row
        compiler_params=pltpu.CompilerParams(
            dimension_semantics=("parallel",),
            vmem_limit_bytes=32 * 1024 * 1024),
        cost_estimate=pl.CostEstimate(
            flops=flops, transcendentals=B, bytes_accessed=bytes_accessed),
    )(x.astype(jnp.float32), w1_bf, b1_r, w2_f, b2_r, w3_r, b3_r)

    # (1, B) lane-dense row -> (B, 1) column (module's output layout).
    return out[0].reshape(B, 1)


def init_params(key):
    # Deterministic init mimicking PyTorch nn.Linear default:
    # U(-1/sqrt(fan_in), 1/sqrt(fan_in)) for both weight and bias.
    def linear_init(k, fan_in, fan_out):
        kw, kb = jax.random.split(k)
        bound = 1.0 / jnp.sqrt(fan_in)
        w = jax.random.uniform(kw, (fan_in, fan_out), jnp.float32, -bound, bound)
        b = jax.random.uniform(kb, (fan_out,), jnp.float32, -bound, bound)
        return w, b

    k1, k2, k3 = jax.random.split(key, 3)
    w1, b1 = linear_init(k1, IN_FEATURES, HIDDEN)
    w2, b2 = linear_init(k2, HIDDEN, HIDDEN)
    w3, b3 = linear_init(k3, HIDDEN, 1)
    return w1, b1, w2, b2, w3, b3


if __name__ == "__main__":
    key = jax.random.PRNGKey(0)
    kp, kx = jax.random.split(key)

    params = init_params(kp)
    batch = 8
    x = jax.random.normal(kx, (batch, IN_FEATURES), jnp.float32)

    out = jax.block_until_ready(mlp_forward(x, params))
    assert out.shape == (batch, 1)

    # Plain-JAX reference with the same bf16 rounding of x / w1 as the kernel.
    w1, b1, w2, b2, w3, b3 = params
    xb = x.astype(jnp.bfloat16).astype(jnp.float32)
    w1b = w1.astype(jnp.bfloat16).astype(jnp.float32)
    h1 = jnp.maximum(xb @ w1b + b1, 0.0)
    h2 = jnp.maximum(h1 @ w2 + b2, 0.0)
    ref = jax.nn.sigmoid(h2 @ w3 + b3)

    assert jnp.allclose(out, ref, atol=2e-3, rtol=2e-3), float(
        jnp.max(jnp.abs(out - ref)))

    print("KERNEL_OK")
</pallas_src>

<mosaic_0001>
module attributes {stable_mosaic.version = 11 : i64} {
  func.func @mlp_kernel(%arg0: i32, %arg1: memref<8x1026xf32, #tpu.memory_space<vmem>>, %arg2: memref<1026x64xbf16, #tpu.memory_space<vmem>>, %arg3: memref<1x64xf32, #tpu.memory_space<vmem>>, %arg4: memref<64x64xf32, #tpu.memory_space<vmem>>, %arg5: memref<1x64xf32, #tpu.memory_space<vmem>>, %arg6: memref<1x64xf32, #tpu.memory_space<vmem>>, %arg7: memref<1xf32, #tpu.memory_space<smem>>, %arg8: memref<1x8xf32, #tpu.memory_space<vmem>>) attributes {dimension_semantics = [#tpu.dimension_semantics<parallel>], iteration_bounds = array<i64: 1>, scalar_prefetch = 0 : i64, scratch_operands = 0 : i64, tpu.core_type = #tpu.core_type<tc>, window_params = [{transform_indices = @transform_0, window_bounds = array<i64: 8, 1026>}, {pipeline_mode = #tpu.pipeline_mode<synchronous>, transform_indices = @transform_1, window_bounds = array<i64: 1026, 64>}, {pipeline_mode = #tpu.pipeline_mode<synchronous>, transform_indices = @transform_2, window_bounds = array<i64: 1, 64>}, {pipeline_mode = #tpu.pipeline_mode<synchronous>, transform_indices = @transform_3, window_bounds = array<i64: 64, 64>}, {pipeline_mode = #tpu.pipeline_mode<synchronous>, transform_indices = @transform_4, window_bounds = array<i64: 1, 64>}, {pipeline_mode = #tpu.pipeline_mode<synchronous>, transform_indices = @transform_5, window_bounds = array<i64: 1, 64>}, {transform_indices = @transform_6, window_bounds = array<i64: 1>}, {transform_indices = @transform_7, window_bounds = array<i64: 1, 8>}]} {
    %c0 = arith.constant 0 : index
    %c0_0 = arith.constant 0 : index
    %0 = vector.load %arg1[%c0, %c0_0] : memref<8x1026xf32, #tpu.memory_space<vmem>>, vector<8x1026xf32>
    %1 = arith.truncf %0 : vector<8x1026xf32> to vector<8x1026xbf16>
    %c0_1 = arith.constant 0 : index
    %c0_2 = arith.constant 0 : index
    %2 = vector.load %arg2[%c0_1, %c0_2] : memref<1026x64xbf16, #tpu.memory_space<vmem>>, vector<1026x64xbf16>
    %cst = arith.constant dense<0.000000e+00> : vector<8x64xf32>
    %3 = tpu.matmul %1, %2, %cst {dimension_numbers = #tpu.dot_dimension_numbers<[1], [0], [0], [1], [0, 0, 1, 1], [], []>} : vector<8x1026xbf16>, vector<1026x64xbf16>, vector<8x64xf32> -> vector<8x64xf32>
    %c0_3 = arith.constant 0 : index
    %c0_4 = arith.constant 0 : index
    %4 = vector.load %arg3[%c0_3, %c0_4] : memref<1x64xf32, #tpu.memory_space<vmem>>, vector<1x64xf32>
    %5 = vector.broadcast %4 : vector<1x64xf32> to vector<8x64xf32>
    %6 = arith.addf %3, %5 : vector<8x64xf32>
    %cst_5 = arith.constant 0.000000e+00 : f32
    %7 = vector.broadcast %cst_5 : f32 to vector<8x64xf32>
    %8 = arith.maximumf %6, %7 : vector<8x64xf32>
    %c0_6 = arith.constant 0 : index
    %c0_7 = arith.constant 0 : index
    %9 = vector.load %arg4[%c0_6, %c0_7] : memref<64x64xf32, #tpu.memory_space<vmem>>, vector<64x64xf32>
    %cst_8 = arith.constant dense<0.000000e+00> : vector<8x64xf32>
    %10 = tpu.matmul %8, %9, %cst_8 {dimension_numbers = #tpu.dot_dimension_numbers<[1], [0], [0], [1], [0, 0, 1, 1], [], []>} : vector<8x64xf32>, vector<64x64xf32>, vector<8x64xf32> -> vector<8x64xf32>
    %c0_9 = arith.constant 0 : index
    %c0_10 = arith.constant 0 : index
    %11 = vector.load %arg5[%c0_9, %c0_10] : memref<1x64xf32, #tpu.memory_space<vmem>>, vector<1x64xf32>
    %12 = vector.broadcast %11 : vector<1x64xf32> to vector<8x64xf32>
    %13 = arith.addf %10, %12 : vector<8x64xf32>
    %cst_11 = arith.constant 0.000000e+00 : f32
    %14 = vector.broadcast %cst_11 : f32 to vector<8x64xf32>
    %15 = arith.maximumf %13, %14 : vector<8x64xf32>
    %c0_12 = arith.constant 0 : index
    %c0_13 = arith.constant 0 : index
    %16 = vector.load %arg6[%c0_12, %c0_13] : memref<1x64xf32, #tpu.memory_space<vmem>>, vector<1x64xf32>
    %cst_14 = arith.constant dense<0.000000e+00> : vector<1x8xf32>
    %17 = tpu.matmul %16, %15, %cst_14 {dimension_numbers = #tpu.dot_dimension_numbers<[1], [1], [0], [0], [0, 0, 1, 0], [], []>} : vector<1x64xf32>, vector<8x64xf32>, vector<1x8xf32> -> vector<1x8xf32>
    %c0_15 = arith.constant 0 : index
    %18 = memref.load %arg7[%c0_15] : memref<1xf32, #tpu.memory_space<smem>>
    %19 = vector.broadcast %18 : f32 to vector<1x8xf32>
    %20 = arith.addf %17, %19 : vector<1x8xf32>
    %cst_16 = arith.constant 0.000000e+00 : f32
    %21 = vector.broadcast %cst_16 : f32 to vector<1x8xf32>
    %22 = arith.subf %21, %20 : vector<1x8xf32>
    %23 = math.exp %22 : vector<1x8xf32>
    %cst_17 = arith.constant 1.000000e+00 : f32
    %24 = vector.broadcast %cst_17 : f32 to vector<1x8xf32>
    %25 = arith.addf %24, %23 : vector<1x8xf32>
    %cst_18 = arith.constant 1.000000e+00 : f32
    %26 = vector.broadcast %cst_18 : f32 to vector<1x8xf32>
    %27 = arith.divf %26, %25 : vector<1x8xf32>
    %c0_19 = arith.constant 0 : index
    %c0_20 = arith.constant 0 : index
    %28 = vector.load %arg8[%c0_19, %c0_20] : memref<1x8xf32, #tpu.memory_space<vmem>>, vector<1x8xf32>
    tpu.vector_store %arg8[%c0_19, %c0_20], %27 {strides = array<i32>} : memref<1x8xf32, #tpu.memory_space<vmem>>, vector<1x8xf32>,
    return
  }
  func.func @transform_0(%arg0: i32) -> (i32, i32) {
    %c0_i32 = arith.constant 0 : i32
    %c0_i32_0 = arith.constant 0 : i32
    return %arg0, %c0_i32 : i32, i32
  }
  func.func @transform_1(%arg0: i32) -> (i32, i32) {
    %c0_i32 = arith.constant 0 : i32
    %c0_i32_0 = arith.constant 0 : i32
    %c0_i32_1 = arith.constant 0 : i32
    return %c0_i32, %c0_i32_0 : i32, i32
  }
  func.func @transform_2(%arg0: i32) -> (i32, i32) {
    %c0_i32 = arith.constant 0 : i32
    %c0_i32_0 = arith.constant 0 : i32
    %c0_i32_1 = arith.constant 0 : i32
    return %c0_i32, %c0_i32_0 : i32, i32
  }
  func.func @transform_3(%arg0: i32) -> (i32, i32) {
    %c0_i32 = arith.constant 0 : i32
    %c0_i32_0 = arith.constant 0 : i32
    %c0_i32_1 = arith.constant 0 : i32
    return %c0_i32, %c0_i32_0 : i32, i32
  }
  func.func @transform_4(%arg0: i32) -> (i32, i32) {
    %c0_i32 = arith.constant 0 : i32
    %c0_i32_0 = arith.constant 0 : i32
    %c0_i32_1 = arith.constant 0 : i32
    return %c0_i32, %c0_i32_0 : i32, i32
  }
  func.func @transform_5(%arg0: i32) -> (i32, i32) {
    %c0_i32 = arith.constant 0 : i32
    %c0_i32_0 = arith.constant 0 : i32
    %c0_i32_1 = arith.constant 0 : i32
    return %c0_i32, %c0_i32_0 : i32, i32
  }
  func.func @transform_6(%arg0: i32) -> i32 {
    %c0_i32 = arith.constant 0 : i32
    %c0_i32_0 = arith.constant 0 : i32
    return %c0_i32 : i32
  }
  func.func @transform_7(%arg0: i32) -> (i32, i32) {
    %c0_i32 = arith.constant 0 : i32
    %c0_i32_0 = arith.constant 0 : i32
    return %c0_i32, %arg0 : i32, i32
  }
}

</mosaic_0001>

<bundles_post_ra>
// kernel: tpu_custom_call.1
= control target key start
LH: loop header
LB: loop body
LE: loop exit
PB: predicated region body
PF: predicated region fallthrough
CT: control target
= control target key end

     0   :  { %vm574_vm0 = vcmask 1040384   ;;  %s1595_s0 = inlined_call_operand.vmem [shape: f32[8,1026], index: 0, kind: input, shape index: {}]   ;;  %s1596_s1 = inlined_call_operand.vmem [shape: bf16[1026,64], index: 1, kind: input, shape index: {}]   ;;  %s1597_s2 = inlined_call_operand.vmem [shape: f32[1,64], index: 2, kind: input, shape index: {}]   ;;  %s1598_s3 = inlined_call_operand.vmem [shape: f32[64,64], index: 3, kind: input, shape index: {}]   ;;  %s1599_s4 = inlined_call_operand.vmem [shape: f32[1,64], index: 4, kind: input, shape index: {}]   ;;  %s1600_s5 = inlined_call_operand.vmem [shape: f32[1,64], index: 5, kind: input, shape index: {}]   ;;  %s1601_s6 = inlined_call_operand.<no memory space> [shape: f32[1], index: 6, kind: input, shape index: {}]   ;;  %s1602_s7 = inlined_call_operand.hbm [shape: f32[1,8], index: 7, kind: output, shape index: {}]  }
   0x1   :  { %v1188_v0 = vld [vmem:[%s1596_s1 + $0x40] sm:$0xff]   ;;  %v1192_v4 = vld [vmem:[%s1596_s1 + $0x48] sm:$0xff]   ;;  %v1196_v8 = vld [vmem:[%s1596_s1 + $0x50] sm:$0xff]  }
   0x2   :  { %v1189_v1 = vld [vmem:[%s1596_s1 + $0xc0] sm:$0xff]   ;;  %1041 = vmatprep.subr.bf16.mxu0 %v1188_v0  ;;  %v1193_v5 = vld [vmem:[%s1596_s1 + $0xc8] sm:$0xff]   ;;  %v1197_v9 = vld [vmem:[%s1596_s1 + $0xd0] sm:$0xff]  }
   0x3   :  { %v1190_v2 = vld [vmem:[%s1596_s1] sm:$0xff]   ;;  %1063 = vmatprep.subr.bf16.mxu1 %v1189_v1  ;;  %v1194_v6 = vld [vmem:[%s1596_s1 + $0x8] sm:$0xff]   ;;  %v1198_v10 = vld [vmem:[%s1596_s1 + $0x10] sm:$0xff]  }
   0x4   :  { %v1191_v3 = vld [vmem:[%s1596_s1 + $0x80] sm:$0xff]   ;;  %1042 = vmatpush3.bf16.msra.mxu0 %v1190_v2  ;;  %v1195_v7 = vld [vmem:[%s1596_s1 + $0x88] sm:$0xff]   ;;  %v1199_v11 = vld [vmem:[%s1596_s1 + $0x90] sm:$0xff]  }
   0x5   :  { %1064 = vmatpush3.bf16.msra.mxu1 %v1191_v3  ;;  %1043 = vmatprep.subr.bf16.mxu0 %v1192_v4  ;;  %v1200_v12 = vld [vmem:[%s1596_s1 + $0x58] sm:$0xff]   ;;  %v1204_v16 = vld [vmem:[%s1596_s1 + $0x60] sm:$0xff]   ;;  %v1208_v20 = vld [vmem:[%s1596_s1 + $0x68] sm:$0xff]  }
   0x6   :  { %1065 = vmatprep.subr.bf16.mxu1 %v1193_v5  ;;  %v1201_v13 = vld [vmem:[%s1596_s1 + $0xd8] sm:$0xff]   ;;  %v1205_v17 = vld [vmem:[%s1596_s1 + $0xe0] sm:$0xff]   ;;  %v1209_v21 = vld [vmem:[%s1596_s1 + $0xe8] sm:$0xff]  }
   0x7   :  { %v1202_v14 = vld [vmem:[%s1596_s1 + $0x18] sm:$0xff]   ;;  %v1206_v18 = vld [vmem:[%s1596_s1 + $0x20] sm:$0xff]   ;;  %v1210_v22 = vld [vmem:[%s1596_s1 + $0x28] sm:$0xff]  }
   0x8   :  { %1044 = vmatpush3.bf16.msra.mxu0 %v1194_v6  ;;  %v1203_v15 = vld [vmem:[%s1596_s1 + $0x98] sm:$0xff]   ;;  %v1207_v19 = vld [vmem:[%s1596_s1 + $0xa0] sm:$0xff]   ;;  %v1211_v23 = vld [vmem:[%s1596_s1 + $0xa8] sm:$0xff]  }
   0x9   :  { %1066 = vmatpush3.bf16.msra.mxu1 %v1195_v7  ;;  %1045 = vmatprep.subr.bf16.mxu0 %v1196_v8  ;;  %v1212_v24 = vld [vmem:[%s1596_s1 + $0x70] sm:$0xff]   ;;  %v1216_v28 = vld [vmem:[%s1596_s1 + $0x78] sm:$0xff]   ;;  %v30_v32 = vld [vmem:[%s1595_s0 + $0x8] sm:$0xff] }
   0xa   :  { %1067 = vmatprep.subr.bf16.mxu1 %v1197_v9  ;;  %v1213_v25 = vld [vmem:[%s1596_s1 + $0xf0] sm:$0xff]   ;;  %v1217_v29 = vld [vmem:[%s1596_s1 + $0xf8] sm:$0xff]   ;;  %v29_v33 = vld [vmem:[%s1595_s0] sm:$0xff]  ;;  %v39_v35 = vpack.c.bf16 %v30_v32, %v30_v32 }
   0xb   :  { %v1214_v26 = vld [vmem:[%s1596_s1 + $0x30] sm:$0xff]   ;;  %v1218_v30 = vld [vmem:[%s1596_s1 + $0x38] sm:$0xff]   ;;  %v38_v36 = vpack.c.bf16 %v29_v33, %v29_v33  ;;  %v1220_v38 = vld [vmem:[%s1596_s1 + $0x140] sm:$0xff]  }
   0xc   :  { %1046 = vmatpush3.bf16.msra.mxu0 %v1198_v10  ;;  %v1215_v27 = vld [vmem:[%s1596_s1 + $0xb0] sm:$0xff]   ;;  %v1219_v31 = vld [vmem:[%s1596_s1 + $0xb8] sm:$0xff]   ;;  %v1221_v39 = vld [vmem:[%s1596_s1 + $0x1c0] sm:$0xff]   ;;  %610 = vmatprep.mubr.bf16.mxu0 %v39_v35 }
   0xd   :  { %1068 = vmatpush3.bf16.msra.mxu1 %v1199_v11  ;;  %1047 = vmatprep.subr.bf16.mxu0 %v1200_v12  ;;  %v32_v34 = vld [vmem:[%s1595_s0 + $0x18] sm:$0xff]  ;;  %v31_v40 = vld [vmem:[%s1595_s0 + $0x10] sm:$0xff]  ;;  %v1222_v42 = vld [vmem:[%s1596_s1 + $0x100] sm:$0xff]  }
   0xe   :  { %1069 = vmatprep.subr.bf16.mxu1 %v1201_v13  ;;  %v41_v37 = vpack.c.bf16 %v32_v34, %v32_v34  ;;  %v40_v41 = vpack.c.bf16 %v31_v40, %v31_v40  ;;  %v1223_v43 = vld [vmem:[%s1596_s1 + $0x180] sm:$0xff]   ;;  %v1224_v44 = vld [vmem:[%s1596_s1 + $0x148] sm:$0xff]   ;;  %v1228_v48 = vld [vmem:[%s1596_s1 + $0x150] sm:$0xff]  }
   0xf   :  { %v1225_v45 = vld [vmem:[%s1596_s1 + $0x1c8] sm:$0xff]   ;;  %v1229_v49 = vld [vmem:[%s1596_s1 + $0x1d0] sm:$0xff]   ;;  %v1232_v52 = vld [vmem:[%s1596_s1 + $0x158] sm:$0xff]  }
  0x10   :  { %1048 = vmatpush3.bf16.msra.mxu0 %v1202_v14  ;;  %650 = vmatprep.mubr.bf16.mxu1 %v41_v37  ;;  %v1226_v46 = vld [vmem:[%s1596_s1 + $0x108] sm:$0xff]   ;;  %v1230_v50 = vld [vmem:[%s1596_s1 + $0x110] sm:$0xff]   ;;  %v1233_v53 = vld [vmem:[%s1596_s1 + $0x1d8] sm:$0xff]  }
  0x11   :  { %1070 = vmatpush3.bf16.msra.mxu1 %v1203_v15  ;;  %1049 = vmatprep.subr.bf16.mxu0 %v1204_v16  ;;  %v1227_v47 = vld [vmem:[%s1596_s1 + $0x188] sm:$0xff]   ;;  %v1231_v51 = vld [vmem:[%s1596_s1 + $0x190] sm:$0xff]   ;;  %v1234_v54 = vld [vmem:[%s1596_s1 + $0x118] sm:$0xff]   ;;  %v1281_v16 = vmov 0.0  }
  0x12   :  { %1071 = vmatprep.subr.bf16.mxu1 %v1205_v17  ;;  %v1235_v55 = vld [vmem:[%s1596_s1 + $0x198] sm:$0xff]   ;;  %v1236_v56 = vld [vmem:[%s1596_s1 + $0x160] sm:$0xff]   ;;  %v1240_v60 = vld [vmem:[%s1596_s1 + $0x168] sm:$0xff]  }
  0x13   :  { %v1237_v57 = vld [vmem:[%s1596_s1 + $0x1e0] sm:$0xff]   ;;  %v1241_v61 = vld [vmem:[%s1596_s1 + $0x1e8] sm:$0xff]   ;;  %v1244_v0 = vld [vmem:[%s1596_s1 + $0x170] sm:$0xff]  }
  0x14   :  { %1050 = vmatpush3.bf16.msra.mxu0 %v1206_v18  ;;  %v1238_v58 = vld [vmem:[%s1596_s1 + $0x120] sm:$0xff]   ;;  %v1242_v62 = vld [vmem:[%s1596_s1 + $0x128] sm:$0xff]   ;;  %v1245_v1 = vld [vmem:[%s1596_s1 + $0x1f0] sm:$0xff]  }
  0x15   :  { %1072 = vmatpush3.bf16.msra.mxu1 %v1207_v19  ;;  %1051 = vmatprep.subr.bf16.mxu0 %v1208_v20  ;;  %v1239_v59 = vld [vmem:[%s1596_s1 + $0x1a0] sm:$0xff]   ;;  %v1243_v63 = vld [vmem:[%s1596_s1 + $0x1a8] sm:$0xff]   ;;  %v1246_v2 = vld [vmem:[%s1596_s1 + $0x130] sm:$0xff]  }
  0x16   :  { %1073 = vmatprep.subr.bf16.mxu1 %v1209_v21  ;;  %v1247_v3 = vld [vmem:[%s1596_s1 + $0x1b0] sm:$0xff]   ;;  %v1248_v4 = vld [vmem:[%s1596_s1 + $0x178] sm:$0xff]   ;;  %v34_v8 = vld [vmem:[%s1595_s0 + $0x28] sm:$0xff] }
  0x17   :  { %v1249_v5 = vld [vmem:[%s1596_s1 + $0x1f8] sm:$0xff]   ;;  %v43_v10 = vpack.c.bf16 %v34_v8, %v34_v8  ;;  %v33_v12 = vld [vmem:[%s1595_s0 + $0x20] sm:$0xff]  ;;  %v35_v13 = vld [vmem:[%s1595_s0 + $0x30] sm:$0xff] }
  0x18   :  { %1052 = vmatpush3.bf16.msra.mxu0 %v1210_v22  ;;  %v1250_v6 = vld [vmem:[%s1596_s1 + $0x138] sm:$0xff]   ;;  %v42_v14 = vpack.c.bf16 %v33_v12, %v33_v12  ;;  %v44_v15 = vpack.c.bf16 %v35_v13, %v35_v13  ;;  %v1252_v17 = vld [vmem:[%s1596_s1 + $0x200] ss:$0 sps:$4 sm:$0x11]  }
  0x19   :  { %1074 = vmatpush3.bf16.msra.mxu1 %v1211_v23  ;;  %1053 = vmatprep.subr.bf16.mxu0 %v1212_v24  ;;  %v1251_v7 = vld [vmem:[%s1596_s1 + $0x1b8] sm:$0xff]  }
  0x1a   :  { %1075 = vmatprep.subr.bf16.mxu1 %v1213_v25  ;;  %v36_v9 = vld [vmem:[%s1595_s0 + $0x38] sm:$0xff] }
  0x1b   :  { %v45_v11 = vpack.c.bf16 %v36_v9, %v36_v9 }
  0x1c   :  { %1054 = vmatpush3.bf16.msra.mxu0 %v1214_v26 }
  0x1d   :  { %1076 = vmatpush3.bf16.msra.mxu1 %v1215_v27  ;;  %1055 = vmatprep.subr.bf16.mxu0 %v1216_v28 }
  0x1e   :  { %1077 = vmatprep.subr.bf16.mxu1 %v1217_v29 }
  0x20   :  { %1056 = vmatpush3.bf16.msra.mxu0 %v1218_v30 }
  0x21   :  { %1078 = vmatpush3.bf16.msra.mxu1 %v1219_v31  ;;  %1085 = vmatprep.subr.bf16.mxu0 %v1220_v38 }
  0x22   :  { %1107 = vmatprep.subr.bf16.mxu1 %v1221_v39 }
  0x23   :  { %611 = vmatmul.mubr.bf16.vlgmr.msra.gmra.mrb[0].mxu0 %v38_v36 }
  0x24   :  { %651 = vmatmul.mubr.bf16.vlgmr.msra.gmra.mrb[0].mxu1 %v40_v41  ;;  %1086 = vmatpush3.bf16.msra.mxu0 %v1222_v42 }
  0x25   :  { %1108 = vmatpush3.bf16.msra.mxu1 %v1223_v43  ;;  %1087 = vmatprep.subr.bf16.mxu0 %v1224_v44 }
  0x26   :  { %1109 = vmatprep.subr.bf16.mxu1 %v1225_v45 }
  0x28   :  { %1088 = vmatpush3.bf16.msra.mxu0 %v1226_v46 }
  0x29   :  { %1110 = vmatpush3.bf16.msra.mxu1 %v1227_v47  ;;  %1089 = vmatprep.subr.bf16.mxu0 %v1228_v48 }
  0x2a   :  { %1111 = vmatprep.subr.bf16.mxu1 %v1229_v49 }
  0x2c   :  { %1090 = vmatpush3.bf16.msra.mxu0 %v1230_v50 }
  0x2d   :  { %1112 = vmatpush3.bf16.msra.mxu1 %v1231_v51  ;;  %1091 = vmatprep.subr.bf16.mxu0 %v1232_v52 }
  0x2e   :  { %1113 = vmatprep.subr.bf16.mxu1 %v1233_v53 }
  0x30   :  { %1092 = vmatpush3.bf16.msra.mxu0 %v1234_v54 }
  0x31   :  { %1114 = vmatpush3.bf16.msra.mxu1 %v1235_v55  ;;  %1093 = vmatprep.subr.bf16.mxu0 %v1236_v56 }
  0x32   :  { %1115 = vmatprep.subr.bf16.mxu1 %v1237_v57 }
  0x34   :  { %1094 = vmatpush3.bf16.msra.mxu0 %v1238_v58 }
  0x35   :  { %1116 = vmatpush3.bf16.msra.mxu1 %v1239_v59  ;;  %1095 = vmatprep.subr.bf16.mxu0 %v1240_v60 }
  0x36   :  { %1117 = vmatprep.subr.bf16.mxu1 %v1241_v61 }
  0x38   :  { %1096 = vmatpush3.bf16.msra.mxu0 %v1242_v62 }
  0x39   :  { %1118 = vmatpush3.bf16.msra.mxu1 %v1243_v63  ;;  %1097 = vmatprep.subr.bf16.mxu0 %v1244_v0 }
  0x3a   :  { %1119 = vmatprep.subr.bf16.mxu1 %v1245_v1 }
  0x3c   :  { %1098 = vmatpush3.bf16.msra.mxu0 %v1246_v2 }
  0x3d   :  { %1120 = vmatpush3.bf16.msra.mxu1 %v1247_v3  ;;  %1099 = vmatprep.subr.bf16.mxu0 %v1248_v4 }
  0x3e   :  { %1121 = vmatprep.subr.bf16.mxu1 %v1249_v5 }
  0x40   :  { %1100 = vmatpush3.bf16.msra.mxu0 %v1250_v6 }
  0x41   :  { %1122 = vmatpush3.bf16.msra.mxu1 %v1251_v7  ;;  %1142 = vmatprep.subr.bf16.mxu0 %v1281_v16 }
  0x42   :  { %13 = vsyncpa [#allocation4], 0  ;;  %690 = vmatprep.mubr.bf16.mxu0 %v43_v10  ;;  %730 = vmatprep.mubr.bf16.mxu1 %v45_v11  ;;  %v576_v18 = vsel %vm574_vm0, %v1252_v17, 0  ;;  %v37_v19 = vld [vmem:[%s1595_s0 + $0x40] sm:$0xff]  ;;  %vm1282_vm1 = vmmov 0   ;;  %vm570_vm2 = vcmask 15360   ;;  %v871_v7 = vstv %s1601_s6 }
  0x43   :  { %691 = vmatmul.mubr.bf16.vlgmr.msra.gmra.mrb[4].mxu0 %v42_v14  ;;  %v46_v20 = vpack.c.bf16 %v37_v19, %v37_v19  ;;  %v779_v21 = vld [vmem:[%s1598_s3] sm:$0xff]  ;;  %v780_v22 = vld [vmem:[%s1598_s3 + $0x8] sm:$0xff]  ;;  %v1283_v23 = vmov 0.0|0.0   ;;  %v781_v25 = vld [vmem:[%s1598_s3 + $0x10] sm:$0xff]  ;;  %vm794_vm3 = vcmask 523264   ;;  %vm954_vm4 = vcmask 57344  }
  0x44   :  { %731 = vmatmul.mubr.bf16.vlgmr.msra.gmra.mrb[4].mxu1 %v44_v15  ;;  %1143 = vmatpush3.bf16.msra.mxu0 %v576_v18  ;;  %v1173_v24 = vpack.c.bf16 %v780_v22, %v779_v21  ;;  %v782_v26 = vld [vmem:[%s1598_s3 + $0x18] sm:$0xff]  ;;  %v783_v28 = vld [vmem:[%s1598_s3 + $0x20] sm:$0xff]  ;;  %v784_v29 = vld [vmem:[%s1598_s3 + $0x28] sm:$0xff] }
  0x45   :  { %1144 = vmatprep.mubr.msk.bf16.mxu0 %vm1282_vm1, %v1281_v16  ;;  %1164 = vmatprep.mubr.msk.f32.mxu1 %vm1282_vm1, %v1281_v16  ;;  %v1176_v27 = vpack.c.bf16 %v782_v26, %v781_v25  ;;  %v1179_v30 = vpack.c.bf16 %v784_v29, %v783_v28  ;;  %v785_v31 = vld [vmem:[%s1598_s3 + $0x30] sm:$0xff]  ;;  %v786_v32 = vld [vmem:[%s1598_s3 + $0x38] sm:$0xff]  ;;  %v970_v35 = vld [vmem:[%s1597_s2] ss:$0 sm:$0xff] }
  0x46   :  { %1167 = vmatprep.subr.mxu0 %v1281_v16  ;;  %1172 = vmatprep.subr.bf16.mxu1 %v1283_v23  ;;  %v1182_v33 = vpack.c.bf16 %v786_v32, %v785_v31  ;;  %v1037_v1 = vld [vmem:[%s1599_s4] ss:$0 sm:$0xff]  ;;  %s1284_s4 = smov [#allocation3]  }
  0x47   :  { %1174 = vmatpush3.bf16.msra.mxu1 %v1173_v24  ;;  %v869_v6 = vld [vmem:[%s1600_s5] sm:$0x1]  ;;  %s962_s8 = sshll.u32 %s1284_s4, 4  ;;  %s963_s8 = int_to_ptr.vmem [resolvable:$true] %s962_s8 }
  0x48   :  { %1175 = vmatprep.subr.bf16.mxu1 %v1283_v23  ;;  %s1257_s5 = scalar_lea.vmem %s963_s8, 16  ;;  %s1261_s9 = scalar_lea.vmem %s963_s8, 32 }
  0x49   :  { %p1258_p0 = scmp.ne.s32.totalorder %s963_s8, %s1257_s5  ;;  %p1262_p1 = scmp.lt.s32.totalorder %s963_s8, %s963_s8 }
  0x4a   :  { %p1263_p2 = scmp.lt.s32.totalorder %s1261_s9, %s1257_s5 }
  0x4b   :  { %1145 = vmatmul.mubr.msk.bf16.vlgmr.msra.gmra.mrb[8].mxu0 %vm570_vm2, %v46_v20  ;;  %1177 = vmatpush3.bf16.msra.mxu1 %v1176_v27 }
  0x4c   :  { %1169 = vmatprep.mubr.msk.f32.mxu0 %vm1282_vm1, %v1281_v16  ;;  %1178 = vmatprep.subr.bf16.mxu1 %v1283_v23  ;;  %p1264_p3 = por %p1263_p2, %p1262_p1 }
  0x4e   :  { %p1265_p4 = pnand %p1264_p3, %p1258_p0 }
  0x4f   :  { %1180 = vmatpush3.bf16.msra.mxu1 %v1179_v30 }
  0x50   :  { %1181 = vmatprep.subr.bf16.mxu1 %v1283_v23 }
  0x53   :  { %1183 = vmatpush3.bf16.msra.mxu1 %v1182_v33 }
  0xf6   :  { %v1057_v34 = vpop.f32.mrb[0].mxu0 }
  0xf7   :  { %v1058_v36 = vpop.f32.mrb[1].mxu0  ;;  %v1079_v38 = vpop.f32.mrb[0].mxu1 }
  0xf8   :  { %v1059_v37 = vadd.f32 %v1058_v36, %v1057_v34  ;;  %v1060_v39 = vpop.f32.mrb[2].mxu0  ;;  %v1080_v40 = vpop.f32.mrb[1].mxu1 }
  0xf9   :  { %v1061_v41 = vpop.f32.mrb[3].mxu0  ;;  %v1081_v43 = vadd.f32 %v1080_v40, %v1079_v38  ;;  %v1082_v44 = vpop.f32.mrb[2].mxu1 }
  0xfa   :  { %v613_v42 = vadd.f32 %v1059_v37, %v970_v35  ;;  %v1083_v45 = vpop.f32.mrb[3].mxu1 }
  0xfc   :  { %v653_v46 = vadd.f32 %v1081_v43, %v613_v42 }
 0x116   :  { %v1101_v47 = vpop.f32.mrb[4].mxu0 }
 0x117   :  { %v1123_v48 = vpop.f32.mrb[4].mxu1  ;;  %v1102_v49 = vpop.f32.mrb[5].mxu0 }
 0x118   :  { %v1103_v50 = vadd.f32 %v1102_v49, %v1101_v47  ;;  %v1124_v51 = vpop.f32.mrb[5].mxu1  ;;  %v1104_v52 = vpop.f32.mrb[6].mxu0 }
 0x119   :  { %v1125_v53 = vadd.f32 %v1124_v51, %v1123_v48  ;;  %v1126_v54 = vpop.f32.mrb[6].mxu1  ;;  %v1105_v55 = vpop.f32.mrb[7].mxu0 }
 0x11a   :  { %v693_v56 = vadd.f32 %v1103_v50, %v653_v46  ;;  %v1127_v57 = vpop.f32.mrb[7].mxu1 }
 0x11c   :  { %v733_v58 = vadd.f32 %v1125_v53, %v693_v56 }
 0x11e   :  { %v772_v59 = vpop.f32.mrb[8].mxu0 }
 0x11f   :  { %v773_v60 = vadd.f32 %v772_v59, %v733_v58  ;;  %v1146_v61 = vpop.f32.mrb[9].mxu0 }
 0x120   :  { %v775_v62 = vpop.f32.mrb[10].mxu0 }
 0x121   :  { %v778_v63 = vmax.f32 %v773_v60, 0.0  ;;  %v1147_v0 = vpop.f32.mrb[11].mxu0 }
 0x123   :  { %1165 = vmatmul.mubr.msk.f32.vlgmr.msra.gmra.mrb[8].mxu1 %vm794_vm3, %v778_v63 }
 0x1f6   :  { %v864_v2 = vpop.f32.mrb[8].mxu1 }
 0x1f7   :  { %v865_v3 = vadd.f32 %v1037_v1, %v864_v2  ;;  %v1166_v4 = vpop.f32.mrb[9].mxu1 }
 0x1f9   :  { %v868_v5 = vmax.f32 %v865_v3, 0.0 }
 0x1fb   :  { %1168 = vmatpush3.xpose.msk.msra.mxu0 %vm794_vm3, %v868_v5 }
 0x1fe   :  { %1170 = vmatmul.mubr.msk.f32.vlgmr.msra.gmra.mrb[12].mxu0 %vm794_vm3, %v869_v6 }
 0x2d1   :  { %v944_v8 = vpop.f32.mrb[12].mxu0 }
 0x2d2   :  { %v945_v9 = vadd.f32 %v944_v8, %v871_v7  ;;  %v1171_v10 = vpop.f32.mrb[13].mxu0 }
 0x2d4   :  { %v948_v11 = vsub.f32 0.0, %v945_v9 }
 0x2d6   :  { %v949_v12 = vmul.f32 1.442695, %v948_v11 }
 0x2d8   :  { %1253 = vpow2.f32 %v949_v12 }
 0x2e2   :  { %v1254_v13 = vpop.eup %1253 }
 0x2e3   :  { %v951_v14 = vadd.f32 1.0, %v1254_v13 }
 0x2e5   :  { %1255 = vrcp.f32 %v951_v14 }
 0x2ef   :  { %v1256_v15 = vpop.eup %1255 }
 0x2f0   :  { %955 = vst.msk [vmem:[#allocation3] sm:$0x1] %vm954_vm4, %v1256_v15 }
 0x2f1   :  { %1268 = shalt.err (!%p1265_p4)
}
 0x2f2   :  { %s1269_s1 = scalar_lea.hbm %s1602_s7, 16 }
 0x2f3   :  { %p1270_p5 = scmp.ne.s32.totalorder %s1602_s7, %s1269_s1  ;;  %p1273_p6 = scmp.lt.u32.totalorder %s1269_s1, %s1602_s7 }
 0x2f5   :  { %p1275_p7 = pnand %p1273_p6, %p1270_p5 }
 0x2f7   :  { %1278 = shalt.err (!%p1275_p7)
}
 0x2f8   :  { %965 = dma.vmem_to_hbm [thread:$0]  %s963_s8, 16, %s1602_s7, [#allocation4]  }
 0x2f9   :  { %1279 = dma.done.wait [#allocation4], 16  }
 0x2fa   :  { %1280 = vsyncadd [#allocation4], 4294967280 }
 0x2fb   :  { %969 = vsyncpa [#allocation4], 1 }

</bundles_post_ra>
